<compile_context>
chip_gen: v5e
topology: v5e:2x2
jax: 0.10.0
libtpu: 0.0.40
codegen_flags: <defaults>
</compile_context>

<pallas_src>
import functools

import jax
import jax.numpy as jnp
from jax import lax
from jax.experimental import pallas as pl
from jax.experimental.pallas import tpu as pltpu


def _round_up(x, m):
    return ((x + m - 1) // m) * m


def _default_sub_block():
    # v5e: 4x128^2 MXU -> 128-row sub-blocks already fill it and halve vreg
    # pressure.  v6e / v7x: 256-wide MXU -> 256-row sub-blocks.
    try:
        kind = jax.devices()[0].device_kind.lower()
    except Exception:
        return 256
    if "v5 lite" in kind or "v5lite" in kind or "v5e" in kind:
        return 128
    return 256


def _mlp_kernel(x_ref, w1_ref, b1_ref, w2_ref, b2_ref, w3_ref, b3_ref, o_ref,
                *, ts, sub_blocks, unroll):
    """Batch-major fused MLP: x_ref (TM, IN) -> o_ref (TM, OUT).

    Weights arrive pre-transposed ((IN, H), (H, H), (H, OUT)) so every matmul
    uses standard dimension numbers (K = last dim of lhs, first dim of rhs).
    """
    hid = w1_ref.shape[1]
    out = w3_ref.shape[1]
    cdt = w1_ref.dtype  # matmul input dtype (bf16 or f32); accumulation is f32

    # Weights/biases: constant index maps keep them resident in VMEM across all
    # grid steps; load once per step, outside the sub-block loop.
    w1, w2, w3 = w1_ref[...], w2_ref[...], w3_ref[...]
    # Hoisted bias broadcasts: done once per grid step, not per sub-block.
    b1 = jnp.broadcast_to(b1_ref[...], (ts, hid))
    b2 = jnp.broadcast_to(b2_ref[...], (ts, hid))
    b3 = jnp.broadcast_to(b3_ref[...], (ts, out))

    def body(j, carry):
        col = pl.multiple_of(j * ts, ts)             # ts-aligned sub-block start
        xs = x_ref[pl.ds(col, ts), :].astype(cdt)    # (ts, IN), batch-major
        # MXU matmuls with f32 accumulation; bias-add / ReLU stay f32 on the VPU.
        h1 = jnp.dot(xs, w1, preferred_element_type=jnp.float32) + b1
        h1 = jnp.maximum(h1, 0.0)
        h2 = jnp.dot(h1.astype(cdt), w2, preferred_element_type=jnp.float32) + b2
        h2 = jnp.maximum(h2, 0.0)
        y = jnp.dot(h2.astype(cdt), w3, preferred_element_type=jnp.float32) + b3
        o_ref[pl.ds(col, ts), :] = y.astype(o_ref.dtype)
        return carry

    # Bounded interleave: unroll=2 keeps two independent 3-matmul chains in
    # flight (hides MXU result latency) without unbounded vreg live ranges.
    lax.fori_loop(0, sub_blocks, body, 0, unroll=unroll)


def control_mlp_forward(x, params, *, block_batch=4096, sub_block=None,
                        matmul_dtype=jnp.bfloat16,
                        dimension_semantics=("parallel",)):
    """ControlMLP forward: x (B, input_dim) -> (B, output_dim) float32.

    `params` use the PyTorch Linear layout: w* is (out_features, in_features),
    b* is (out_features,).
    """
    w1, b1, w2, b2, w3, b3 = (params[k] for k in ("w1", "b1", "w2", "b2", "w3", "b3"))
    B, in_dim = x.shape
    hid = w1.shape[0]
    out_dim = w3.shape[0]

    ts = int(sub_block) if sub_block is not None else _default_sub_block()
    assert ts % 128 == 0, "sub_block must be a multiple of 128"

    # Batch tile: as fat as block_batch allows (amortizes the ~0.35us per-step
    # overhead); per-step VMEM is KiB-to-few-MiB scale on every generation, so
    # VMEM (incl. v7x's 64 MiB) is not the constraint here.
    tm = max(ts, min(_round_up(block_batch, ts), _round_up(B, ts)))
    assert tm % ts == 0
    sub_blocks = tm // ts
    unroll = min(2, sub_blocks)

    b_pad = _round_up(B, tm)
    grid = (b_pad // tm,)

    # No transpose / cast of x in the wrapper: the kernel reads x batch-major
    # and casts tiles in VMEM.  Pad only for ragged batches (zero wrapper ops
    # on x when B % tm == 0).
    x_in = x if b_pad == B else jnp.pad(x, ((0, b_pad - B), (0, 0)))

    # Pre-transposed weights (tiny, one-time) -> standard matmul dims in-kernel.
    w1t = jnp.transpose(w1).astype(matmul_dtype)   # (in_dim, hid)
    w2t = jnp.transpose(w2).astype(matmul_dtype)   # (hid, hid)
    w3t = jnp.transpose(w3).astype(matmul_dtype)   # (hid, out_dim)
    b1r = b1.reshape(1, hid).astype(jnp.float32)
    b2r = b2.reshape(1, hid).astype(jnp.float32)
    b3r = b3.reshape(1, out_dim).astype(jnp.float32)

    # Constant block index -> weights/biases DMA'd once, resident in VMEM.
    const = lambda a: pl.BlockSpec(a.shape, lambda i: (0,) * a.ndim)

    flops = 2 * b_pad * (in_dim * hid + hid * hid + hid * out_dim)
    bytes_accessed = int(
        x_in.size * x_in.dtype.itemsize + b_pad * out_dim * 4
        + sum(a.size * a.dtype.itemsize for a in (w1t, w2t, w3t, b1r, b2r, b3r)))

    out = pl.pallas_call(
        functools.partial(_mlp_kernel, ts=ts, sub_blocks=sub_blocks, unroll=unroll),
        out_shape=jax.ShapeDtypeStruct((b_pad, out_dim), jnp.float32),
        grid=grid,
        in_specs=[
            pl.BlockSpec((tm, in_dim), lambda i: (i, 0)),   # x tile, double-buffered
            const(w1t), const(b1r),
            const(w2t), const(b2r),
            const(w3t), const(b3r),
        ],
        out_specs=pl.BlockSpec((tm, out_dim), lambda i: (i, 0)),
        compiler_params=pltpu.CompilerParams(
            dimension_semantics=tuple(dimension_semantics),
        ),
        cost_estimate=pl.CostEstimate(flops=flops, transcendentals=0,
                                      bytes_accessed=bytes_accessed),
    )(x_in, w1t, b1r, w2t, b2r, w3t, b3r)

    # Padded tail rows hold ReLU(bias) garbage; drop them (no-op if B % tm == 0).
    return out if b_pad == B else out[:B]


def init_params(key, input_dim=9, hidden_dim=64, output_dim=2):
    """PyTorch-Linear-style init and layout: W (out, in), b (out,)."""
    ks = jax.random.split(key, 6)

    def lin(kw, kb, fan_in, fan_out):
        bound = 1.0 / jnp.sqrt(float(fan_in))
        w = jax.random.uniform(kw, (fan_out, fan_in), jnp.float32, -bound, bound)
        b = jax.random.uniform(kb, (fan_out,), jnp.float32, -bound, bound)
        return w, b

    w1, b1 = lin(ks[0], ks[1], input_dim, hidden_dim)
    w2, b2 = lin(ks[2], ks[3], hidden_dim, hidden_dim)
    w3, b3 = lin(ks[4], ks[5], hidden_dim, output_dim)
    return {"w1": w1, "b1": b1, "w2": w2, "b2": b2, "w3": w3, "b3": b3}


def reference_forward(x, p, matmul_dtype=jnp.float32):
    c = lambda a: a.astype(matmul_dtype)
    h1 = jnp.maximum(
        jnp.dot(c(x), c(p["w1"]).T, preferred_element_type=jnp.float32) + p["b1"], 0.0)
    h2 = jnp.maximum(
        jnp.dot(c(h1), c(p["w2"]).T, preferred_element_type=jnp.float32) + p["b2"], 0.0)
    return jnp.dot(c(h2), c(p["w3"]).T, preferred_element_type=jnp.float32) + p["b3"]


if __name__ == "__main__":
    key = jax.random.PRNGKey(0)
    k_params, k_x = jax.random.split(key)

    IN, HID, OUT = 9, 64, 2
    params = init_params(k_params, IN, HID, OUT)

    # (B, block_batch) cases:
    #   (8, 4096)   -> single tiny padded tile
    #   (1029, 512) -> 3-step grid with padded tail (exercises pipelining)
    #   (1029, 4096)-> single fat tile, 5 sub-blocks through the fori_loop
    for B, bb in ((8, 4096), (1029, 512), (1029, 4096)):
        x = jax.random.normal(jax.random.fold_in(k_x, B), (B, IN), jnp.float32)

        # Default path: bf16 matmul inputs, f32 accumulation.
        out = control_mlp_forward(x, params, block_batch=bb)
        jax.block_until_ready(out)
        assert out.shape == (B, OUT)
        ref_bf16 = reference_forward(x, params, matmul_dtype=jnp.bfloat16)
        ref_f32 = reference_forward(x, params, matmul_dtype=jnp.float32)
        assert jnp.allclose(out, ref_bf16, atol=2e-3, rtol=2e-3), "mismatch vs bf16 reference"
        assert jnp.allclose(out, ref_f32, atol=5e-2, rtol=5e-2), "mismatch vs f32 reference"

        # Full-precision path: exact against the f32 reference.
        out_f32 = control_mlp_forward(x, params, block_batch=bb,
                                      matmul_dtype=jnp.float32)
        jax.block_until_ready(out_f32)
        assert jnp.allclose(out_f32, ref_f32, atol=1e-5, rtol=1e-5), "mismatch (f32 path)"

    print("KERNEL_OK")
</pallas_src>

<mosaic_0001>
module attributes {stable_mosaic.version = 11 : i64} {
  func.func @_mlp_kernel(%arg0: i32, %arg1: memref<256x9xf32, #tpu.memory_space<vmem>>, %arg2: memref<9x64xbf16, #tpu.memory_space<vmem>>, %arg3: memref<1x64xf32, #tpu.memory_space<vmem>>, %arg4: memref<64x64xbf16, #tpu.memory_space<vmem>>, %arg5: memref<1x64xf32, #tpu.memory_space<vmem>>, %arg6: memref<64x2xbf16, #tpu.memory_space<vmem>>, %arg7: memref<1x2xf32, #tpu.memory_space<vmem>>, %arg8: memref<256x2xf32, #tpu.memory_space<vmem>>) attributes {dimension_semantics = [#tpu.dimension_semantics<parallel>], iteration_bounds = array<i64: 1>, scalar_prefetch = 0 : i64, scratch_operands = 0 : i64, tpu.core_type = #tpu.core_type<tc>, window_params = [{transform_indices = @transform_0, window_bounds = array<i64: 256, 9>}, {pipeline_mode = #tpu.pipeline_mode<synchronous>, transform_indices = @transform_1, window_bounds = array<i64: 9, 64>}, {pipeline_mode = #tpu.pipeline_mode<synchronous>, transform_indices = @transform_2, window_bounds = array<i64: 1, 64>}, {pipeline_mode = #tpu.pipeline_mode<synchronous>, transform_indices = @transform_3, window_bounds = array<i64: 64, 64>}, {pipeline_mode = #tpu.pipeline_mode<synchronous>, transform_indices = @transform_4, window_bounds = array<i64: 1, 64>}, {pipeline_mode = #tpu.pipeline_mode<synchronous>, transform_indices = @transform_5, window_bounds = array<i64: 64, 2>}, {pipeline_mode = #tpu.pipeline_mode<synchronous>, transform_indices = @transform_6, window_bounds = array<i64: 1, 2>}, {transform_indices = @transform_7, window_bounds = array<i64: 256, 2>}]} {
    %c0 = arith.constant 0 : index
    %c0_0 = arith.constant 0 : index
    %0 = vector.load %arg2[%c0, %c0_0] : memref<9x64xbf16, #tpu.memory_space<vmem>>, vector<9x64xbf16>
    %c0_1 = arith.constant 0 : index
    %c0_2 = arith.constant 0 : index
    %1 = vector.load %arg4[%c0_1, %c0_2] : memref<64x64xbf16, #tpu.memory_space<vmem>>, vector<64x64xbf16>
    %c0_3 = arith.constant 0 : index
    %c0_4 = arith.constant 0 : index
    %2 = vector.load %arg6[%c0_3, %c0_4] : memref<64x2xbf16, #tpu.memory_space<vmem>>, vector<64x2xbf16>
    %c0_5 = arith.constant 0 : index
    %c0_6 = arith.constant 0 : index
    %3 = vector.load %arg3[%c0_5, %c0_6] : memref<1x64xf32, #tpu.memory_space<vmem>>, vector<1x64xf32>
    %4 = vector.shape_cast %3 : vector<1x64xf32> to vector<1x64xf32>
    %5 = vector.broadcast %4 : vector<1x64xf32> to vector<256x64xf32>
    %c0_7 = arith.constant 0 : index
    %c0_8 = arith.constant 0 : index
    %6 = vector.load %arg5[%c0_7, %c0_8] : memref<1x64xf32, #tpu.memory_space<vmem>>, vector<1x64xf32>
    %7 = vector.shape_cast %6 : vector<1x64xf32> to vector<1x64xf32>
    %8 = vector.broadcast %7 : vector<1x64xf32> to vector<256x64xf32>
    %c0_9 = arith.constant 0 : index
    %c0_10 = arith.constant 0 : index
    %9 = vector.load %arg7[%c0_9, %c0_10] : memref<1x2xf32, #tpu.memory_space<vmem>>, vector<1x2xf32>
    %10 = vector.shape_cast %9 : vector<1x2xf32> to vector<1x2xf32>
    %11 = vector.broadcast %10 : vector<1x2xf32> to vector<256x2xf32>
    %c0_i32 = arith.constant 0 : i32
    %c256_i32 = arith.constant 256 : i32
    %12 = arith.muli %c0_i32, %c256_i32 : i32
    %13 = tpu.assume_multiple %12, 256 : i32
    %14 = arith.index_cast %13 : i32 to index
    %c0_11 = arith.constant 0 : index
    %15 = vector.load %arg1[%14, %c0_11] : memref<256x9xf32, #tpu.memory_space<vmem>>, vector<256x9xf32>
    %16 = arith.truncf %15 : vector<256x9xf32> to vector<256x9xbf16>
    %cst = arith.constant dense<0.000000e+00> : vector<256x64xf32>
    %17 = tpu.matmul %16, %0, %cst {dimension_numbers = #tpu.dot_dimension_numbers<[1], [0], [0], [1], [0, 0, 1, 1], [], []>} : vector<256x9xbf16>, vector<9x64xbf16>, vector<256x64xf32> -> vector<256x64xf32>
    %18 = arith.addf %17, %5 : vector<256x64xf32>
    %cst_12 = arith.constant 0.000000e+00 : f32
    %19 = vector.broadcast %cst_12 : f32 to vector<256x64xf32>
    %20 = arith.maximumf %18, %19 : vector<256x64xf32>
    %21 = arith.truncf %20 : vector<256x64xf32> to vector<256x64xbf16>
    %cst_13 = arith.constant dense<0.000000e+00> : vector<256x64xf32>
    %22 = tpu.matmul %21, %1, %cst_13 {dimension_numbers = #tpu.dot_dimension_numbers<[1], [0], [0], [1], [0, 0, 1, 1], [], []>} : vector<256x64xbf16>, vector<64x64xbf16>, vector<256x64xf32> -> vector<256x64xf32>
    %23 = arith.addf %22, %8 : vector<256x64xf32>
    %cst_14 = arith.constant 0.000000e+00 : f32
    %24 = vector.broadcast %cst_14 : f32 to vector<256x64xf32>
    %25 = arith.maximumf %23, %24 : vector<256x64xf32>
    %26 = arith.truncf %25 : vector<256x64xf32> to vector<256x64xbf16>
    %cst_15 = arith.constant dense<0.000000e+00> : vector<256x2xf32>
    %27 = tpu.matmul %26, %2, %cst_15 {dimension_numbers = #tpu.dot_dimension_numbers<[1], [0], [0], [1], [0, 0, 1, 1], [], []>} : vector<256x64xbf16>, vector<64x2xbf16>, vector<256x2xf32> -> vector<256x2xf32>
    %28 = arith.addf %27, %11 : vector<256x2xf32>
    %29 = arith.index_cast %13 : i32 to index
    %c0_16 = arith.constant 0 : index
    %30 = vector.load %arg8[%29, %c0_16] : memref<256x2xf32, #tpu.memory_space<vmem>>, vector<256x2xf32>
    tpu.vector_store %arg8[%29, %c0_16], %28 {strides = array<i32>} : memref<256x2xf32, #tpu.memory_space<vmem>>, vector<256x2xf32>,
    %c1_i32 = arith.constant 1 : i32
    return
  }
  func.func @transform_0(%arg0: i32) -> (i32, i32) {
    %c0_i32 = arith.constant 0 : i32
    %c0_i32_0 = arith.constant 0 : i32
    return %arg0, %c0_i32 : i32, i32
  }
  func.func @transform_1(%arg0: i32) -> (i32, i32) {
    %c0_i32 = arith.constant 0 : i32
    %c0_i32_0 = arith.constant 0 : i32
    %c0_i32_1 = arith.constant 0 : i32
    return %c0_i32, %c0_i32_0 : i32, i32
  }
  func.func @transform_2(%arg0: i32) -> (i32, i32) {
    %c0_i32 = arith.constant 0 : i32
    %c0_i32_0 = arith.constant 0 : i32
    %c0_i32_1 = arith.constant 0 : i32
    return %c0_i32, %c0_i32_0 : i32, i32
  }
  func.func @transform_3(%arg0: i32) -> (i32, i32) {
    %c0_i32 = arith.constant 0 : i32
    %c0_i32_0 = arith.constant 0 : i32
    %c0_i32_1 = arith.constant 0 : i32
    return %c0_i32, %c0_i32_0 : i32, i32
  }
  func.func @transform_4(%arg0: i32) -> (i32, i32) {
    %c0_i32 = arith.constant 0 : i32
    %c0_i32_0 = arith.constant 0 : i32
    %c0_i32_1 = arith.constant 0 : i32
    return %c0_i32, %c0_i32_0 : i32, i32
  }
  func.func @transform_5(%arg0: i32) -> (i32, i32) {
    %c0_i32 = arith.constant 0 : i32
    %c0_i32_0 = arith.constant 0 : i32
    %c0_i32_1 = arith.constant 0 : i32
    return %c0_i32, %c0_i32_0 : i32, i32
  }
  func.func @transform_6(%arg0: i32) -> (i32, i32) {
    %c0_i32 = arith.constant 0 : i32
    %c0_i32_0 = arith.constant 0 : i32
    %c0_i32_1 = arith.constant 0 : i32
    return %c0_i32, %c0_i32_0 : i32, i32
  }
  func.func @transform_7(%arg0: i32) -> (i32, i32) {
    %c0_i32 = arith.constant 0 : i32
    %c0_i32_0 = arith.constant 0 : i32
    return %arg0, %c0_i32 : i32, i32
  }
}

</mosaic_0001>

<bundles_post_ra>
// kernel: tpu_custom_call.1
= control target key start
LH: loop header
LB: loop body
LE: loop exit
PB: predicated region body
PF: predicated region fallthrough
CT: control target
= control target key end

     0   :  { %vm159_vm0 = vcmask 1043456   ;;  %vm160_vm1 = vcmask 1044480   ;;  %v817_v2 = vmov 65535   ;;  %vm110_vm2 = vcmask 72704   ;;  %s1271_s1 = inlined_call_operand.vmem [shape: bf16[9,64], index: 1, kind: input, shape index: {}]   ;;  %s1272_s0 = inlined_call_operand.vmem [shape: f32[256,9], index: 0, kind: input, shape index: {}]   ;;  %s1273_s2 = inlined_call_operand.vmem [shape: f32[1,64], index: 2, kind: input, shape index: {}]   ;;  %s1274_s3 = inlined_call_operand.vmem [shape: bf16[64,64], index: 3, kind: input, shape index: {}]   ;;  %s1275_s4 = inlined_call_operand.vmem [shape: f32[1,64], index: 4, kind: input, shape index: {}]   ;;  %s1276_s5 = inlined_call_operand.vmem [shape: bf16[64,2], index: 5, kind: input, shape index: {}]   ;;  %s1277_s6 = inlined_call_operand.vmem [shape: f32[1,2], index: 6, kind: input, shape index: {}]   ;;  %s1278_s7 = inlined_call_operand.vmem [shape: f32[256,2], index: 7, kind: output, shape index: {}]  }
   0x1   :  { %v713_v0 = vld [vmem:[%s1271_s1] sm:$0xf]  ;;  %v795_v1 = vld [vmem:[%s1271_s1] sm:$0x10]  ;;  %v161_v3 = vsel %vm159_vm0, 4294967295, %v817_v2  ;;  %v58_v7 = vld [vmem:[%s1272_s0 + $0x8] sm:$0xff] }
   0x2   :  { %v714_v4 = vor.u32 %v795_v1, %v713_v0  ;;  %v162_v5 = vsel %vm160_vm1, %v161_v3, 0  ;;  %v57_v6 = vld [vmem:[%s1272_s0] sm:$0xff]  ;;  %v59_v10 = vld [vmem:[%s1272_s0 + $0x10] sm:$0xff]  ;;  %v60_v11 = vld [vmem:[%s1272_s0 + $0x18] sm:$0xff]  ;;  %vm327_vm3 = vcmask 523264   ;;  %vm674_vm4 = vcmask 15360  }
   0x3   :  { %v89_v9 = vpack.c.bf16 %v58_v7, %v57_v6  ;;  %v90_v12 = vpack.c.bf16 %v60_v11, %v59_v10  ;;  %v61_v13 = vld [vmem:[%s1272_s0 + $0x20] sm:$0xff]  ;;  %v62_v14 = vld [vmem:[%s1272_s0 + $0x28] sm:$0xff]  ;;  %v63_v16 = vld [vmem:[%s1272_s0 + $0x30] sm:$0xff] }
   0x4   :  { %v164_v8 = vand.u32 %v714_v4, %v162_v5  ;;  %v91_v15 = vpack.c.bf16 %v62_v14, %v61_v13  ;;  %v64_v17 = vld [vmem:[%s1272_s0 + $0x38] sm:$0xff]  ;;  %v65_v19 = vld [vmem:[%s1272_s0 + $0x40] sm:$0xff]  ;;  %v66_v20 = vld [vmem:[%s1272_s0 + $0x48] sm:$0xff] }
   0x5   :  { %v92_v18 = vpack.c.bf16 %v64_v17, %v63_v16  ;;  %v93_v21 = vpack.c.bf16 %v66_v20, %v65_v19  ;;  %v67_v22 = vld [vmem:[%s1272_s0 + $0x50] sm:$0xff]  ;;  %v68_v23 = vld [vmem:[%s1272_s0 + $0x58] sm:$0xff]  ;;  %v69_v25 = vld [vmem:[%s1272_s0 + $0x60] sm:$0xff] }
   0x6   :  { %173 = vmatpush.bf16.msra.mxu0 %v164_v8  ;;  %804 = vmatpush.bf16.msra.mxu3 %v164_v8  ;;  %v94_v24 = vpack.c.bf16 %v68_v23, %v67_v22  ;;  %v70_v26 = vld [vmem:[%s1272_s0 + $0x68] sm:$0xff]  ;;  %v799_v27 = vld [vmem:[%s1274_s3 + $0x18] sm:$0xff]  ;;  %v798_v29 = vld [vmem:[%s1274_s3 + $0x10] sm:$0xff] }
   0x7   :  { %v95_v28 = vpack.c.bf16 %v70_v26, %v69_v25  ;;  %380 = vmatpush.bf16.msra.mxu1 %v799_v27  ;;  %v797_v30 = vld [vmem:[%s1274_s3 + $0x8] sm:$0xff]  ;;  %v796_v31 = vld [vmem:[%s1274_s3] sm:$0xff]  ;;  %v71_v32 = vld [vmem:[%s1272_s0 + $0x70] sm:$0xff] }
   0x8   :  { %v72_v33 = vld [vmem:[%s1272_s0 + $0x78] sm:$0xff]  ;;  %v73_v35 = vld [vmem:[%s1272_s0 + $0x80] sm:$0xff]  ;;  %v74_v36 = vld [vmem:[%s1272_s0 + $0x88] sm:$0xff] }
   0x9   :  { %715 = vmatmul.msk.bf16.vlgmr.msra.gmra.mxu0 %vm110_vm2, %v89_v9  ;;  %v96_v34 = vpack.c.bf16 %v72_v33, %v71_v32  ;;  %v97_v37 = vpack.c.bf16 %v74_v36, %v73_v35  ;;  %v941_v39 = vld [vmem:[%s1273_s2] ss:$0 sm:$0xff]  ;;  %v75_v45 = vld [vmem:[%s1272_s0 + $0x90] sm:$0xff]  ;;  %v76_v46 = vld [vmem:[%s1272_s0 + $0x98] sm:$0xff] }
   0xa   :  { %805 = vmatpush.bf16.msrb.mxu3 %v799_v27  ;;  %v98_v48 = vpack.c.bf16 %v76_v46, %v75_v45  ;;  %v77_v55 = vld [vmem:[%s1272_s0 + $0xa0] sm:$0xff]  ;;  %v78_v56 = vld [vmem:[%s1272_s0 + $0xa8] sm:$0xff]  ;;  %v83_v60 = vld [vmem:[%s1272_s0 + $0xd0] sm:$0xff] }
   0xb   :  { %381 = vmatpush.bf16.msra.mxu1 %v798_v29  ;;  %v99_v58 = vpack.c.bf16 %v78_v56, %v77_v55  ;;  %v84_v61 = vld [vmem:[%s1272_s0 + $0xd8] sm:$0xff]  ;;  %v79_v4 = vld [vmem:[%s1272_s0 + $0xb0] sm:$0xff]  ;;  %v85_v9 = vld [vmem:[%s1272_s0 + $0xe0] sm:$0xff] }
   0xc   :  { %v102_v62 = vpack.c.bf16 %v84_v61, %v83_v60  ;;  %v80_v5 = vld [vmem:[%s1272_s0 + $0xb8] sm:$0xff]  ;;  %v86_v10 = vld [vmem:[%s1272_s0 + $0xe8] sm:$0xff]  ;;  %v81_v17 = vld [vmem:[%s1272_s0 + $0xc0] sm:$0xff] }
   0xd   :  { %v100_v7 = vpack.c.bf16 %v80_v5, %v79_v4  ;;  %v103_v11 = vpack.c.bf16 %v86_v10, %v85_v9  ;;  %v87_v22 = vld [vmem:[%s1272_s0 + $0xf0] sm:$0xff]  ;;  %v88_v23 = vld [vmem:[%s1272_s0 + $0xf8] sm:$0xff] }
   0xe   :  { %806 = vmatpush.bf16.msrb.mxu3 %v798_v29 }
   0xf   :  { %382 = vmatpush.bf16.msra.mxu1 %v797_v30  ;;  %728 = vmatmul.msk.bf16.vlgmr.msra.gmra.mxu3 %vm110_vm2, %v102_v62 }
  0x12   :  { %807 = vmatpush.bf16.msrb.mxu3 %v797_v30 }
  0x13   :  { %383 = vmatpush.bf16.msra.mxu1 %v796_v31 }
  0x16   :  { %808 = vmatpush.bf16.msrb.mxu3 %v796_v31 }
  0x19   :  { %716 = vmatmul.msk.bf16.gmra.mxu0 %vm110_vm2, %v90_v12 }
  0x1f   :  { %729 = vmatmul.msk.bf16.gmra.mxu3 %vm110_vm2, %v103_v11 }
  0x29   :  { %717 = vmatmul.msk.bf16.gmra.mxu0 %vm110_vm2, %v91_v15 }
  0x39   :  { %718 = vmatmul.msk.bf16.gmra.mxu0 %vm110_vm2, %v92_v18  ;;  %v82_v18 = vld [vmem:[%s1272_s0 + $0xc8] sm:$0xff] }
  0x3a   :  { %v101_v20 = vpack.c.bf16 %v82_v18, %v81_v17 }
  0x49   :  { %719 = vmatmul.msk.bf16.gmra.mxu0 %vm110_vm2, %v93_v21 }
  0x59   :  { %720 = vmatmul.msk.bf16.gmra.mxu0 %vm110_vm2, %v94_v24  ;;  %v104_v24 = vpack.c.bf16 %v88_v23, %v87_v22 }
  0x5b   :  { %730 = vmatmul.msk.bf16.gmra.mxu3 %vm110_vm2, %v104_v24 }
  0x69   :  { %721 = vmatmul.msk.bf16.gmra.mxu0 %vm110_vm2, %v95_v28 }
  0x79   :  { %722 = vmatmul.msk.bf16.gmra.mxu0 %vm110_vm2, %v96_v34 }
  0x86   :  { %v175_v38 = vpop.f32.mrf.mxu0 }
  0x87   :  { %v176_v40 = vadd.f32 %v941_v39, %v175_v38 }
  0x89   :  { %723 = vmatmul.msk.bf16.gmra.mxu0 %vm110_vm2, %v97_v37  ;;  %v255_v43 = vmax.f32 %v176_v40, 0.0 }
  0x8e   :  { %v177_v41 = vpop.f32.mrf.mxu0 }
  0x8f   :  { %v178_v42 = vadd.f32 %v941_v39, %v177_v41 }
  0x91   :  { %v256_v44 = vmax.f32 %v178_v42, 0.0 }
  0x93   :  { %v287_v47 = vpack.c.bf16 %v256_v44, %v255_v43  ;;  %v803_v43 = vld [vmem:[%s1276_s5 + $0x18] sm:$0xff] }
  0x94   :  { %589 = vmatpush.bf16.msra.mxu2 %v803_v43  ;;  %809 = vmatpush.bf16.msra.mxu3 %v803_v43 }
  0x95   :  { %747 = vmatmul.msk.bf16.vlgmr.msra.gmra.mxu1 %vm327_vm3, %v287_v47  ;;  %v802_v47 = vld [vmem:[%s1276_s5 + $0x10] sm:$0xff] }
  0x96   :  { %v180_v49 = vpop.f32.mrf.mxu0 }
  0x97   :  { %v181_v50 = vadd.f32 %v941_v39, %v180_v49  ;;  %v801_v49 = vld [vmem:[%s1276_s5 + $0x8] sm:$0xff] }
  0x98   :  { %590 = vmatpush.bf16.msra.mxu2 %v802_v47  ;;  %810 = vmatpush.bf16.msra.mxu3 %v802_v47 }
  0x99   :  { %724 = vmatmul.msk.bf16.gmra.mxu0 %vm110_vm2, %v98_v48  ;;  %v257_v53 = vmax.f32 %v181_v50, 0.0  ;;  %v800_v50 = vld [vmem:[%s1276_s5] sm:$0xff] }
  0x9c   :  { %591 = vmatpush.bf16.msra.mxu2 %v801_v49  ;;  %811 = vmatpush.bf16.msra.mxu3 %v801_v49 }
  0x9e   :  { %v182_v51 = vpop.f32.mrf.mxu0 }
  0x9f   :  { %v183_v52 = vadd.f32 %v941_v39, %v182_v51 }
  0xa0   :  { %592 = vmatpush.bf16.msra.mxu2 %v800_v50  ;;  %812 = vmatpush.bf16.msra.mxu3 %v800_v50 }
  0xa1   :  { %v258_v54 = vmax.f32 %v183_v52, 0.0 }
  0xa3   :  { %v288_v57 = vpack.c.bf16 %v258_v54, %v257_v53 }
  0xa5   :  { %748 = vmatmul.msk.bf16.gmra.mxu1 %vm327_vm3, %v288_v57 }
  0xa6   :  { %v185_v59 = vpop.f32.mrf.mxu0 }
  0xa7   :  { %v186_v63 = vadd.f32 %v941_v39, %v185_v59 }
  0xa9   :  { %725 = vmatmul.msk.bf16.gmra.mxu0 %vm110_vm2, %v99_v58  ;;  %v259_v2 = vmax.f32 %v186_v63, 0.0 }
  0xae   :  { %v187_v0 = vpop.f32.mrf.mxu0 }
  0xaf   :  { %v188_v1 = vadd.f32 %v941_v39, %v187_v0 }
  0xb1   :  { %v260_v3 = vmax.f32 %v188_v1, 0.0  ;;  %v1034_v1 = vld [vmem:[%s1275_s4] ss:$0 sm:$0xff] }
  0xb3   :  { %v289_v6 = vpack.c.bf16 %v260_v3, %v259_v2 }
  0xb5   :  { %749 = vmatmul.msk.bf16.gmra.mxu1 %vm327_vm3, %v289_v6 }
  0xb6   :  { %v190_v8 = vpop.f32.mrf.mxu0 }
  0xb7   :  { %v191_v12 = vadd.f32 %v941_v39, %v190_v8 }
  0xb9   :  { %726 = vmatmul.msk.bf16.gmra.mxu0 %vm110_vm2, %v100_v7  ;;  %v261_v15 = vmax.f32 %v191_v12, 0.0 }
  0xbe   :  { %v192_v13 = vpop.f32.mrf.mxu0 }
  0xbf   :  { %v193_v14 = vadd.f32 %v941_v39, %v192_v13 }
  0xc1   :  { %v262_v16 = vmax.f32 %v193_v14, 0.0 }
  0xc3   :  { %v290_v19 = vpack.c.bf16 %v262_v16, %v261_v15 }
  0xc5   :  { %750 = vmatmul.msk.bf16.gmra.mxu1 %vm327_vm3, %v290_v19 }
  0xc6   :  { %v195_v21 = vpop.f32.mrf.mxu0 }
  0xc7   :  { %v196_v25 = vadd.f32 %v941_v39, %v195_v21 }
  0xc9   :  { %727 = vmatmul.msk.bf16.gmra.mxu0 %vm110_vm2, %v101_v20  ;;  %v263_v28 = vmax.f32 %v196_v25, 0.0 }
  0xce   :  { %v197_v26 = vpop.f32.mrf.mxu0 }
  0xcf   :  { %v198_v27 = vadd.f32 %v941_v39, %v197_v26 }
  0xd1   :  { %v264_v29 = vmax.f32 %v198_v27, 0.0 }
  0xd3   :  { %v291_v30 = vpack.c.bf16 %v264_v29, %v263_v28 }
  0xd5   :  { %751 = vmatmul.msk.bf16.gmra.mxu1 %vm327_vm3, %v291_v30 }
  0xd6   :  { %v200_v31 = vpop.f32.mrf.mxu0 }
  0xd7   :  { %v201_v32 = vadd.f32 %v941_v39, %v200_v31 }
  0xd9   :  { %v265_v35 = vmax.f32 %v201_v32, 0.0 }
  0xde   :  { %v202_v33 = vpop.f32.mrf.mxu0 }
  0xdf   :  { %v203_v34 = vadd.f32 %v941_v39, %v202_v33 }
  0xe1   :  { %v266_v36 = vmax.f32 %v203_v34, 0.0 }
  0xe3   :  { %v292_v37 = vpack.c.bf16 %v266_v36, %v265_v35 }
  0xe5   :  { %752 = vmatmul.msk.bf16.gmra.mxu1 %vm327_vm3, %v292_v37 }
  0xe6   :  { %v205_v38 = vpop.f32.mrf.mxu0 }
  0xe7   :  { %v206_v40 = vadd.f32 %v941_v39, %v205_v38 }
  0xe9   :  { %v267_v44 = vmax.f32 %v206_v40, 0.0 }
  0xee   :  { %v207_v41 = vpop.f32.mrf.mxu0 }
  0xef   :  { %v208_v42 = vadd.f32 %v941_v39, %v207_v41 }
  0xf1   :  { %v268_v45 = vmax.f32 %v208_v42, 0.0 }
  0xf3   :  { %v293_v46 = vpack.c.bf16 %v268_v45, %v267_v44 }
  0xf5   :  { %753 = vmatmul.msk.bf16.gmra.mxu1 %vm327_vm3, %v293_v46  ;;  %v240_v46 = vpop.f32.mrf.mxu3 }
  0xf6   :  { %v210_v48 = vpop.f32.mrf.mxu0 }
  0xf7   :  { %v211_v51 = vadd.f32 %v941_v39, %v210_v48 }
  0xf9   :  { %v269_v54 = vmax.f32 %v211_v51, 0.0 }
  0xfe   :  { %v212_v52 = vpop.f32.mrf.mxu0 }
  0xff   :  { %v213_v53 = vadd.f32 %v941_v39, %v212_v52 }
 0x101   :  { %v270_v55 = vmax.f32 %v213_v53, 0.0 }
 0x103   :  { %v294_v56 = vpack.c.bf16 %v270_v55, %v269_v54 }
 0x105   :  { %754 = vmatmul.msk.bf16.gmra.mxu1 %vm327_vm3, %v294_v56  ;;  %v242_v56 = vpop.f32.mrf.mxu3 }
 0x106   :  { %v215_v57 = vpop.f32.mrf.mxu0 }
 0x107   :  { %v216_v58 = vadd.f32 %v941_v39, %v215_v57 }
 0x109   :  { %v271_v61 = vmax.f32 %v216_v58, 0.0 }
 0x10e   :  { %v217_v59 = vpop.f32.mrf.mxu0 }
 0x10f   :  { %v218_v60 = vadd.f32 %v941_v39, %v217_v59 }
 0x111   :  { %v272_v62 = vmax.f32 %v218_v60, 0.0 }
 0x112   :  { %v385_v63 = vpop.f32.mrf.mxu1 }
 0x113   :  { %v295_v0 = vpack.c.bf16 %v272_v62, %v271_v61  ;;  %v386_v3 = vadd.f32 %v1034_v1, %v385_v63  ;;  %v245_v63 = vpop.f32.mrf.mxu3 }
 0x115   :  { %755 = vmatmul.msk.bf16.gmra.mxu1 %vm327_vm3, %v295_v0  ;;  %v465_v6 = vmax.f32 %v386_v3, 0.0  ;;  %v241_v0 = vadd.f32 %v941_v39, %v240_v46 }
 0x116   :  { %v220_v2 = vpop.f32.mrf.mxu0 }
 0x117   :  { %v221_v7 = vadd.f32 %v941_v39, %v220_v2  ;;  %v243_v2 = vadd.f32 %v941_v39, %v242_v56 }
 0x119   :  { %v273_v12 = vmax.f32 %v221_v7, 0.0  ;;  %v282_v7 = vmax.f32 %v243_v2, 0.0 }
 0x11a   :  { %v387_v4 = vpop.f32.mrf.mxu1 }
 0x11b   :  { %v388_v5 = vadd.f32 %v1034_v1, %v387_v4 }
 0x11d   :  { %v466_v8 = vmax.f32 %v388_v5, 0.0 }
 0x11e   :  { %v222_v9 = vpop.f32.mrf.mxu0 }
 0x11f   :  { %v497_v10 = vpack.c.bf16 %v466_v8, %v465_v6  ;;  %v223_v11 = vadd.f32 %v941_v39, %v222_v9  ;;  %v281_v6 = vmax.f32 %v241_v0, 0.0 }
 0x121   :  { %v274_v13 = vmax.f32 %v223_v11, 0.0  ;;  %779 = vmatmul.msk.bf16.vlgmr.msra.gmra.mxu2 %vm327_vm3, %v497_v10  ;;  %v300_v10 = vpack.c.bf16 %v282_v7, %v281_v6  ;;  %v247_v11 = vpop.f32.mrf.mxu3 }
 0x122   :  { %v390_v14 = vpop.f32.mrf.mxu1 }
 0x123   :  { %v296_v15 = vpack.c.bf16 %v274_v13, %v273_v12  ;;  %v391_v17 = vadd.f32 %v1034_v1, %v390_v14  ;;  %v246_v14 = vadd.f32 %v941_v39, %v245_v63 }
 0x125   :  { %756 = vmatmul.msk.bf16.gmra.mxu1 %vm327_vm3, %v296_v15  ;;  %v467_v20 = vmax.f32 %v391_v17, 0.0  ;;  %v248_v15 = vadd.f32 %v941_v39, %v247_v11 }
 0x126   :  { %v225_v16 = vpop.f32.mrf.mxu0 }
 0x127   :  { %v226_v21 = vadd.f32 %v941_v39, %v225_v16 }
 0x129   :  { %v275_v26 = vmax.f32 %v226_v21, 0.0  ;;  %v284_v21 = vmax.f32 %v248_v15, 0.0 }
 0x12a   :  { %v392_v18 = vpop.f32.mrf.mxu1 }
 0x12b   :  { %v393_v19 = vadd.f32 %v1034_v1, %v392_v18 }
 0x12d   :  { %v468_v22 = vmax.f32 %v393_v19, 0.0  ;;  %v250_v19 = vpop.f32.mrf.mxu3 }
 0x12e   :  { %v227_v23 = vpop.f32.mrf.mxu0 }
 0x12f   :  { %v498_v24 = vpack.c.bf16 %v468_v22, %v467_v20  ;;  %v228_v25 = vadd.f32 %v941_v39, %v227_v23  ;;  %v283_v20 = vmax.f32 %v246_v14, 0.0 }
 0x131   :  { %v276_v27 = vmax.f32 %v228_v25, 0.0  ;;  %780 = vmatmul.msk.bf16.gmra.mxu2 %vm327_vm3, %v498_v24  ;;  %v301_v24 = vpack.c.bf16 %v284_v21, %v283_v20 }
 0x132   :  { %v395_v28 = vpop.f32.mrf.mxu1 }
 0x133   :  { %v297_v29 = vpack.c.bf16 %v276_v27, %v275_v26  ;;  %v396_v31 = vadd.f32 %v1034_v1, %v395_v28  ;;  %v251_v28 = vadd.f32 %v941_v39, %v250_v19 }
 0x135   :  { %757 = vmatmul.msk.bf16.gmra.mxu1 %vm327_vm3, %v297_v29  ;;  %v469_v34 = vmax.f32 %v396_v31, 0.0  ;;  %v252_v25 = vpop.f32.mrf.mxu3 }
 0x136   :  { %v230_v30 = vpop.f32.mrf.mxu0  ;;  %v253_v29 = vadd.f32 %v941_v39, %v252_v25 }
 0x137   :  { %v231_v35 = vadd.f32 %v941_v39, %v230_v30 }
 0x139   :  { %v277_v41 = vmax.f32 %v231_v35, 0.0 }
 0x13a   :  { %v397_v32 = vpop.f32.mrf.mxu1 }
 0x13b   :  { %v398_v33 = vadd.f32 %v1034_v1, %v397_v32 }
 0x13d   :  { %v470_v36 = vmax.f32 %v398_v33, 0.0  ;;  %v285_v33 = vmax.f32 %v251_v28, 0.0 }
 0x13e   :  { %v232_v37 = vpop.f32.mrf.mxu0 }
 0x13f   :  { %v499_v38 = vpack.c.bf16 %v470_v36, %v469_v34  ;;  %v233_v40 = vadd.f32 %v941_v39, %v232_v37  ;;  %v286_v34 = vmax.f32 %v253_v29, 0.0 }
 0x141   :  { %v278_v42 = vmax.f32 %v233_v40, 0.0  ;;  %781 = vmatmul.msk.bf16.gmra.mxu2 %vm327_vm3, %v499_v38  ;;  %v302_v37 = vpack.c.bf16 %v286_v34, %v285_v33 }
 0x142   :  { %v400_v43 = vpop.f32.mrf.mxu1 }
 0x143   :  { %v298_v44 = vpack.c.bf16 %v278_v42, %v277_v41  ;;  %v401_v47 = vadd.f32 %v1034_v1, %v400_v43 }
 0x145   :  { %758 = vmatmul.msk.bf16.gmra.mxu1 %vm327_vm3, %v298_v44  ;;  %v471_v50 = vmax.f32 %v401_v47, 0.0 }
 0x146   :  { %v235_v45 = vpop.f32.mrf.mxu0 }
 0x147   :  { %v236_v51 = vadd.f32 %v941_v39, %v235_v45 }
 0x149   :  { %v279_v57 = vmax.f32 %v236_v51, 0.0  ;;  %v1088_v51 = vld [vmem:[%s1277_s6] ss:$0 sm:$0xff] }
 0x14a   :  { %v402_v48 = vpop.f32.mrf.mxu1 }
 0x14b   :  { %v403_v49 = vadd.f32 %v1034_v1, %v402_v48 }
 0x14d   :  { %v472_v52 = vmax.f32 %v403_v49, 0.0 }
 0x14e   :  { %v237_v53 = vpop.f32.mrf.mxu0 }
 0x14f   :  { %v500_v54 = vpack.c.bf16 %v472_v52, %v471_v50  ;;  %v238_v55 = vadd.f32 %v941_v39, %v237_v53 }
 0x151   :  { %v280_v58 = vmax.f32 %v238_v55, 0.0  ;;  %782 = vmatmul.msk.bf16.gmra.mxu2 %vm327_vm3, %v500_v54 }
 0x152   :  { %v405_v59 = vpop.f32.mrf.mxu1 }
 0x153   :  { %v299_v60 = vpack.c.bf16 %v280_v58, %v279_v57  ;;  %v406_v61 = vadd.f32 %v1034_v1, %v405_v59 }
 0x155   :  { %759 = vmatmul.msk.bf16.vlgmr.msrb.gmra.mxu3 %vm327_vm3, %v299_v60  ;;  %v473_v4 = vmax.f32 %v406_v61, 0.0 }
 0x15a   :  { %v407_v62 = vpop.f32.mrf.mxu1 }
 0x15b   :  { %v408_v3 = vadd.f32 %v1034_v1, %v407_v62 }
 0x15d   :  { %v474_v5 = vmax.f32 %v408_v3, 0.0 }
 0x15f   :  { %v501_v8 = vpack.c.bf16 %v474_v5, %v473_v4 }
 0x161   :  { %783 = vmatmul.msk.bf16.gmra.mxu2 %vm327_vm3, %v501_v8 }
 0x162   :  { %v410_v9 = vpop.f32.mrf.mxu1 }
 0x163   :  { %v411_v12 = vadd.f32 %v1034_v1, %v410_v9 }
 0x165   :  { %760 = vmatmul.msk.bf16.gmra.mxu3 %vm327_vm3, %v300_v10  ;;  %v475_v17 = vmax.f32 %v411_v12, 0.0 }
 0x16a   :  { %v412_v13 = vpop.f32.mrf.mxu1 }
 0x16b   :  { %v413_v16 = vadd.f32 %v1034_v1, %v412_v13 }
 0x16d   :  { %v476_v18 = vmax.f32 %v413_v16, 0.0 }
 0x16f   :  { %v502_v22 = vpack.c.bf16 %v476_v18, %v475_v17 }
 0x171   :  { %784 = vmatmul.msk.bf16.gmra.mxu2 %vm327_vm3, %v502_v22 }
 0x172   :  { %v415_v23 = vpop.f32.mrf.mxu1 }
 0x173   :  { %v416_v26 = vadd.f32 %v1034_v1, %v415_v23 }
 0x175   :  { %761 = vmatmul.msk.bf16.gmra.mxu3 %vm327_vm3, %v301_v24  ;;  %v477_v31 = vmax.f32 %v416_v26, 0.0 }
 0x17a   :  { %v417_v27 = vpop.f32.mrf.mxu1 }
 0x17b   :  { %v418_v30 = vadd.f32 %v1034_v1, %v417_v27 }
 0x17d   :  { %v478_v32 = vmax.f32 %v418_v30, 0.0 }
 0x17f   :  { %v503_v35 = vpack.c.bf16 %v478_v32, %v477_v31 }
 0x181   :  { %785 = vmatmul.msk.bf16.gmra.mxu2 %vm327_vm3, %v503_v35 }
 0x182   :  { %v420_v36 = vpop.f32.mrf.mxu1 }
 0x183   :  { %v421_v38 = vadd.f32 %v1034_v1, %v420_v36 }
 0x185   :  { %762 = vmatmul.msk.bf16.gmra.mxu3 %vm327_vm3, %v302_v37  ;;  %v479_v42 = vmax.f32 %v421_v38, 0.0 }
 0x18a   :  { %v422_v40 = vpop.f32.mrf.mxu1 }
 0x18b   :  { %v423_v41 = vadd.f32 %v1034_v1, %v422_v40 }
 0x18d   :  { %v480_v39 = vmax.f32 %v423_v41, 0.0 }
 0x18f   :  { %v504_v43 = vpack.c.bf16 %v480_v39, %v479_v42 }
 0x191   :  { %786 = vmatmul.msk.bf16.gmra.mxu2 %vm327_vm3, %v504_v43 }
 0x192   :  { %v425_v44 = vpop.f32.mrf.mxu1 }
 0x193   :  { %v426_v45 = vadd.f32 %v1034_v1, %v425_v44 }
 0x195   :  { %v481_v48 = vmax.f32 %v426_v45, 0.0 }
 0x19a   :  { %v427_v46 = vpop.f32.mrf.mxu1 }
 0x19b   :  { %v428_v47 = vadd.f32 %v1034_v1, %v427_v46 }
 0x19d   :  { %v482_v49 = vmax.f32 %v428_v47, 0.0 }
 0x19f   :  { %v505_v50 = vpack.c.bf16 %v482_v49, %v481_v48 }
 0x1a1   :  { %787 = vmatmul.msk.bf16.gmra.mxu2 %vm327_vm3, %v505_v50 }
 0x1a2   :  { %v430_v52 = vpop.f32.mrf.mxu1 }
 0x1a3   :  { %v431_v55 = vadd.f32 %v1034_v1, %v430_v52 }
 0x1a4   :  { %v594_v53 = vpop.f32.mrf.mxu2 }
 0x1a5   :  { %v595_v54 = vadd.f32 %v1088_v51, %v594_v53  ;;  %v483_v59 = vmax.f32 %v431_v55, 0.0 }
 0x1a7   :  { %675 = vst.msk [vmem:[%s1278_s7] sm:$0xff] %vm674_vm4, %v595_v54 }
 0x1aa   :  { %v432_v56 = vpop.f32.mrf.mxu1 }
 0x1ab   :  { %v433_v57 = vadd.f32 %v1034_v1, %v432_v56 }
 0x1ac   :  { %v596_v58 = vpop.f32.mrf.mxu2 }
 0x1ad   :  { %v484_v60 = vmax.f32 %v433_v57, 0.0  ;;  %v597_v61 = vadd.f32 %v1088_v51, %v596_v58 }
 0x1af   :  { %v506_v62 = vpack.c.bf16 %v484_v60, %v483_v59  ;;  %676 = vst.msk [vmem:[%s1278_s7 + $0x8] sm:$0xff] %vm674_vm4, %v597_v61 }
 0x1b1   :  { %788 = vmatmul.msk.bf16.gmra.mxu2 %vm327_vm3, %v506_v62 }
 0x1b2   :  { %v435_v63 = vpop.f32.mrf.mxu1 }
 0x1b3   :  { %v436_v3 = vadd.f32 %v1034_v1, %v435_v63 }
 0x1b4   :  { %v599_v0 = vpop.f32.mrf.mxu2 }
 0x1b5   :  { %v600_v2 = vadd.f32 %v1088_v51, %v599_v0  ;;  %v485_v7 = vmax.f32 %v436_v3, 0.0 }
 0x1b7   :  { %677 = vst.msk [vmem:[%s1278_s7 + $0x10] sm:$0xff] %vm674_vm4, %v600_v2 }
 0x1ba   :  { %v437_v4 = vpop.f32.mrf.mxu1 }
 0x1bb   :  { %v438_v5 = vadd.f32 %v1034_v1, %v437_v4 }
 0x1bc   :  { %v601_v6 = vpop.f32.mrf.mxu2 }
 0x1bd   :  { %v486_v8 = vmax.f32 %v438_v5, 0.0  ;;  %v602_v9 = vadd.f32 %v1088_v51, %v601_v6 }
 0x1bf   :  { %v507_v10 = vpack.c.bf16 %v486_v8, %v485_v7  ;;  %678 = vst.msk [vmem:[%s1278_s7 + $0x18] sm:$0xff] %vm674_vm4, %v602_v9 }
 0x1c1   :  { %789 = vmatmul.msk.bf16.gmra.mxu2 %vm327_vm3, %v507_v10 }
 0x1c2   :  { %v440_v11 = vpop.f32.mrf.mxu1 }
 0x1c3   :  { %v441_v14 = vadd.f32 %v1034_v1, %v440_v11 }
 0x1c4   :  { %v604_v12 = vpop.f32.mrf.mxu2 }
 0x1c5   :  { %v605_v13 = vadd.f32 %v1088_v51, %v604_v12  ;;  %v487_v18 = vmax.f32 %v441_v14, 0.0 }
 0x1c7   :  { %679 = vst.msk [vmem:[%s1278_s7 + $0x20] sm:$0xff] %vm674_vm4, %v605_v13 }
 0x1ca   :  { %v442_v15 = vpop.f32.mrf.mxu1 }
 0x1cb   :  { %v443_v16 = vadd.f32 %v1034_v1, %v442_v15 }
 0x1cc   :  { %v606_v17 = vpop.f32.mrf.mxu2 }
 0x1cd   :  { %v488_v19 = vmax.f32 %v443_v16, 0.0  ;;  %v607_v20 = vadd.f32 %v1088_v51, %v606_v17 }
 0x1cf   :  { %v508_v21 = vpack.c.bf16 %v488_v19, %v487_v18  ;;  %680 = vst.msk [vmem:[%s1278_s7 + $0x28] sm:$0xff] %vm674_vm4, %v607_v20 }
 0x1d1   :  { %790 = vmatmul.msk.bf16.gmra.mxu2 %vm327_vm3, %v508_v21 }
 0x1d4   :  { %v609_v22 = vpop.f32.mrf.mxu2 }
 0x1d5   :  { %v610_v23 = vadd.f32 %v1088_v51, %v609_v22 }
 0x1d7   :  { %681 = vst.msk [vmem:[%s1278_s7 + $0x30] sm:$0xff] %vm674_vm4, %v610_v23 }
 0x1d8   :  { %v445_v24 = vpop.f32.mrf.mxu3 }
 0x1d9   :  { %v446_v27 = vadd.f32 %v1034_v1, %v445_v24 }
 0x1db   :  { %v489_v30 = vmax.f32 %v446_v27, 0.0 }
 0x1dc   :  { %v611_v25 = vpop.f32.mrf.mxu2 }
 0x1dd   :  { %v612_v26 = vadd.f32 %v1088_v51, %v611_v25 }
 0x1df   :  { %682 = vst.msk [vmem:[%s1278_s7 + $0x38] sm:$0xff] %vm674_vm4, %v612_v26 }
 0x1e0   :  { %v447_v28 = vpop.f32.mrf.mxu3 }
 0x1e1   :  { %v448_v29 = vadd.f32 %v1034_v1, %v447_v28 }
 0x1e3   :  { %v490_v31 = vmax.f32 %v448_v29, 0.0 }
 0x1e4   :  { %v614_v32 = vpop.f32.mrf.mxu2 }
 0x1e5   :  { %v509_v33 = vpack.c.bf16 %v490_v31, %v489_v30  ;;  %v615_v34 = vadd.f32 %v1088_v51, %v614_v32 }
 0x1e7   :  { %683 = vst.msk [vmem:[%s1278_s7 + $0x40] sm:$0xff] %vm674_vm4, %v615_v34  ;;  %791 = vmatmul.msk.bf16.vlgmr.msra.gmra.mxu3 %vm327_vm3, %v509_v33 }
 0x1e8   :  { %v450_v35 = vpop.f32.mrf.mxu3 }
 0x1e9   :  { %v451_v38 = vadd.f32 %v1034_v1, %v450_v35 }
 0x1eb   :  { %v491_v42 = vmax.f32 %v451_v38, 0.0 }
 0x1ec   :  { %v616_v36 = vpop.f32.mrf.mxu2 }
 0x1ed   :  { %v617_v37 = vadd.f32 %v1088_v51, %v616_v36 }
 0x1ef   :  { %684 = vst.msk [vmem:[%s1278_s7 + $0x48] sm:$0xff] %vm674_vm4, %v617_v37 }
 0x1f0   :  { %v452_v40 = vpop.f32.mrf.mxu3 }
 0x1f1   :  { %v453_v41 = vadd.f32 %v1034_v1, %v452_v40 }
 0x1f3   :  { %v492_v39 = vmax.f32 %v453_v41, 0.0 }
 0x1f4   :  { %v619_v43 = vpop.f32.mrf.mxu2 }
 0x1f5   :  { %v510_v44 = vpack.c.bf16 %v492_v39, %v491_v42  ;;  %v620_v45 = vadd.f32 %v1088_v51, %v619_v43 }
 0x1f7   :  { %685 = vst.msk [vmem:[%s1278_s7 + $0x50] sm:$0xff] %vm674_vm4, %v620_v45  ;;  %792 = vmatmul.msk.bf16.gmra.mxu3 %vm327_vm3, %v510_v44 }
 0x1f8   :  { %v455_v46 = vpop.f32.mrf.mxu3 }
 0x1f9   :  { %v456_v49 = vadd.f32 %v1034_v1, %v455_v46 }
 0x1fb   :  { %v493_v53 = vmax.f32 %v456_v49, 0.0 }
 0x1fc   :  { %v621_v47 = vpop.f32.mrf.mxu2 }
 0x1fd   :  { %v622_v48 = vadd.f32 %v1088_v51, %v621_v47 }
 0x1ff   :  { %686 = vst.msk [vmem:[%s1278_s7 + $0x58] sm:$0xff] %vm674_vm4, %v622_v48 }
 0x200   :  { %v457_v50 = vpop.f32.mrf.mxu3 }
 0x201   :  { %v458_v52 = vadd.f32 %v1034_v1, %v457_v50 }
 0x203   :  { %v494_v54 = vmax.f32 %v458_v52, 0.0 }
 0x204   :  { %v624_v55 = vpop.f32.mrf.mxu2 }
 0x205   :  { %v511_v56 = vpack.c.bf16 %v494_v54, %v493_v53  ;;  %v625_v57 = vadd.f32 %v1088_v51, %v624_v55 }
 0x207   :  { %687 = vst.msk [vmem:[%s1278_s7 + $0x60] sm:$0xff] %vm674_vm4, %v625_v57  ;;  %793 = vmatmul.msk.bf16.gmra.mxu3 %vm327_vm3, %v511_v56 }
 0x208   :  { %v460_v58 = vpop.f32.mrf.mxu3 }
 0x209   :  { %v461_v61 = vadd.f32 %v1034_v1, %v460_v58 }
 0x20b   :  { %v495_v0 = vmax.f32 %v461_v61, 0.0 }
 0x20c   :  { %v626_v59 = vpop.f32.mrf.mxu2 }
 0x20d   :  { %v627_v60 = vadd.f32 %v1088_v51, %v626_v59 }
 0x20f   :  { %688 = vst.msk [vmem:[%s1278_s7 + $0x68] sm:$0xff] %vm674_vm4, %v627_v60 }
 0x210   :  { %v462_v62 = vpop.f32.mrf.mxu3 }
 0x211   :  { %v463_v63 = vadd.f32 %v1034_v1, %v462_v62 }
 0x213   :  { %v496_v2 = vmax.f32 %v463_v63, 0.0 }
 0x214   :  { %v629_v3 = vpop.f32.mrf.mxu2 }
 0x215   :  { %v512_v4 = vpack.c.bf16 %v496_v2, %v495_v0  ;;  %v630_v5 = vadd.f32 %v1088_v51, %v629_v3 }
 0x217   :  { %689 = vst.msk [vmem:[%s1278_s7 + $0x70] sm:$0xff] %vm674_vm4, %v630_v5  ;;  %794 = vmatmul.msk.bf16.gmra.mxu3 %vm327_vm3, %v512_v4 }
 0x21c   :  { %v631_v6 = vpop.f32.mrf.mxu2 }
 0x21d   :  { %v632_v7 = vadd.f32 %v1088_v51, %v631_v6 }
 0x21f   :  { %690 = vst.msk [vmem:[%s1278_s7 + $0x78] sm:$0xff] %vm674_vm4, %v632_v7 }
 0x224   :  { %v634_v1 = vpop.f32.mrf.mxu2 }
 0x225   :  { %v635_v8 = vadd.f32 %v1088_v51, %v634_v1 }
 0x227   :  { %691 = vst.msk [vmem:[%s1278_s7 + $0x80] sm:$0xff] %vm674_vm4, %v635_v8 }
 0x22c   :  { %v636_v9 = vpop.f32.mrf.mxu2 }
 0x22d   :  { %v637_v10 = vadd.f32 %v1088_v51, %v636_v9 }
 0x22f   :  { %692 = vst.msk [vmem:[%s1278_s7 + $0x88] sm:$0xff] %vm674_vm4, %v637_v10 }
 0x234   :  { %v639_v11 = vpop.f32.mrf.mxu2 }
 0x235   :  { %v640_v12 = vadd.f32 %v1088_v51, %v639_v11 }
 0x237   :  { %693 = vst.msk [vmem:[%s1278_s7 + $0x90] sm:$0xff] %vm674_vm4, %v640_v12 }
 0x23c   :  { %v641_v13 = vpop.f32.mrf.mxu2 }
 0x23d   :  { %v642_v14 = vadd.f32 %v1088_v51, %v641_v13 }
 0x23f   :  { %694 = vst.msk [vmem:[%s1278_s7 + $0x98] sm:$0xff] %vm674_vm4, %v642_v14 }
 0x244   :  { %v644_v15 = vpop.f32.mrf.mxu2 }
 0x245   :  { %v645_v16 = vadd.f32 %v1088_v51, %v644_v15 }
 0x247   :  { %695 = vst.msk [vmem:[%s1278_s7 + $0xa0] sm:$0xff] %vm674_vm4, %v645_v16 }
 0x24c   :  { %v646_v17 = vpop.f32.mrf.mxu2 }
 0x24d   :  { %v647_v18 = vadd.f32 %v1088_v51, %v646_v17 }
 0x24f   :  { %696 = vst.msk [vmem:[%s1278_s7 + $0xa8] sm:$0xff] %vm674_vm4, %v647_v18 }
 0x254   :  { %v649_v19 = vpop.f32.mrf.mxu2 }
 0x255   :  { %v650_v20 = vadd.f32 %v1088_v51, %v649_v19 }
 0x257   :  { %697 = vst.msk [vmem:[%s1278_s7 + $0xb0] sm:$0xff] %vm674_vm4, %v650_v20 }
 0x25c   :  { %v651_v21 = vpop.f32.mrf.mxu2 }
 0x25d   :  { %v652_v22 = vadd.f32 %v1088_v51, %v651_v21 }
 0x25f   :  { %698 = vst.msk [vmem:[%s1278_s7 + $0xb8] sm:$0xff] %vm674_vm4, %v652_v22 }
 0x26a   :  { %v654_v23 = vpop.f32.mrf.mxu3 }
 0x26b   :  { %v655_v24 = vadd.f32 %v1088_v51, %v654_v23 }
 0x26d   :  { %699 = vst.msk [vmem:[%s1278_s7 + $0xc0] sm:$0xff] %vm674_vm4, %v655_v24 }
 0x272   :  { %v656_v25 = vpop.f32.mrf.mxu3 }
 0x273   :  { %v657_v26 = vadd.f32 %v1088_v51, %v656_v25 }
 0x275   :  { %700 = vst.msk [vmem:[%s1278_s7 + $0xc8] sm:$0xff] %vm674_vm4, %v657_v26 }
 0x27a   :  { %v659_v27 = vpop.f32.mrf.mxu3 }
 0x27b   :  { %v660_v28 = vadd.f32 %v1088_v51, %v659_v27 }
 0x27d   :  { %701 = vst.msk [vmem:[%s1278_s7 + $0xd0] sm:$0xff] %vm674_vm4, %v660_v28 }
 0x282   :  { %v661_v29 = vpop.f32.mrf.mxu3 }
 0x283   :  { %v662_v30 = vadd.f32 %v1088_v51, %v661_v29 }
 0x285   :  { %702 = vst.msk [vmem:[%s1278_s7 + $0xd8] sm:$0xff] %vm674_vm4, %v662_v30 }
 0x28a   :  { %v664_v31 = vpop.f32.mrf.mxu3 }
 0x28b   :  { %v665_v32 = vadd.f32 %v1088_v51, %v664_v31 }
 0x28d   :  { %703 = vst.msk [vmem:[%s1278_s7 + $0xe0] sm:$0xff] %vm674_vm4, %v665_v32 }
 0x292   :  { %v666_v33 = vpop.f32.mrf.mxu3 }
 0x293   :  { %v667_v34 = vadd.f32 %v1088_v51, %v666_v33 }
 0x295   :  { %704 = vst.msk [vmem:[%s1278_s7 + $0xe8] sm:$0xff] %vm674_vm4, %v667_v34 }
 0x29a   :  { %v669_v35 = vpop.f32.mrf.mxu3 }
 0x29b   :  { %v670_v36 = vadd.f32 %v1088_v51, %v669_v35 }
 0x29d   :  { %705 = vst.msk [vmem:[%s1278_s7 + $0xf0] sm:$0xff] %vm674_vm4, %v670_v36 }
 0x2a2   :  { %v671_v37 = vpop.f32.mrf.mxu3 }
 0x2a3   :  { %v672_v38 = vadd.f32 %v1088_v51, %v671_v37 }
 0x2a5   :  { %706 = vst.msk [vmem:[%s1278_s7 + $0xf8] sm:$0xff] %vm674_vm4, %v672_v38 }

</bundles_post_ra>
